<compile_context>
chip_gen: v5e
topology: v5e:2x2
jax: 0.10.0
libtpu: 0.0.40
codegen_flags: <defaults>
</compile_context>

<pallas_src>
import functools

import jax
import jax.numpy as jnp
from jax.experimental import pallas as pl
from jax.experimental.pallas import tpu as pltpu


_NEG_SLOPE = 0.01   # nn.LeakyReLU default negative slope


def _vit_block(x, idx):
    # TODO(synk): ViTblock source was not provided in the excerpt; treated as
    # identity.  The per-tile fusion below is only valid if the real ViT block
    # is pointwise per spatial position.
    del idx
    return x


def _leaky_relu(x):
    return jnp.where(x >= 0.0, x, _NEG_SLOPE * x)


def _dot(w, x):
    return jnp.dot(w, x, preferred_element_type=jnp.float32)


# ---------------------------------------------------------------------------
# shared in-kernel pieces
# ---------------------------------------------------------------------------

def _conv_chain(x, wrefs, dg1, dg2):
    """split -> conv0+LeakyReLU -> conv1+LeakyReLU -> last_conv on one
    (C, tile_s) channels-first tile.  Weights are pre-split along Cin so no
    channel concatenation is ever materialized in VMEM."""
    (w0a, w0b, b0, w1a, w1b, w1c, b1, wla, wlb, wlc, bl) = wrefs
    in0 = x[:dg2, :]
    in1 = x[dg2:dg2 + dg1, :]
    in2 = x[dg2 + dg1:, :]

    out0 = _vit_block(in0, 0)
    h1 = _dot(w0a[...], out0) + _dot(w0b[...], in1) + b0[...]
    out1 = _vit_block(_leaky_relu(h1), 1)
    h2 = (_dot(w1a[...], out0) + _dot(w1b[...], out1) + _dot(w1c[...], in2)
          + b1[...])
    out2 = _vit_block(_leaky_relu(h2), 2)
    y = (_dot(wla[...], out0) + _dot(wlb[...], out1) + _dot(wlc[...], out2)
         + bl[...])
    return y


def _accum_pooled_sum(acc_ref, y, s, n_s, tile_s, s_true, needs_mask):
    """acc_ref (C,1) += per-channel spatial sum of y.  The lane-validity mask
    (for a ragged last tile) is applied ONLY on the last tile."""
    @pl.when(s == 0)
    def _():
        acc_ref[...] = jnp.zeros_like(acc_ref)

    if needs_mask:
        @pl.when(s < n_s - 1)
        def _():
            acc_ref[...] += jnp.sum(y, axis=1, keepdims=True)

        @pl.when(s == n_s - 1)
        def _():
            lane = jax.lax.broadcasted_iota(jnp.int32, y.shape, 1)
            valid = (s * tile_s + lane) < s_true
            acc_ref[...] += jnp.sum(jnp.where(valid, y, 0.0), axis=1,
                                    keepdims=True)
    else:
        acc_ref[...] += jnp.sum(y, axis=1, keepdims=True)


# ---------------------------------------------------------------------------
# Fully-fused single pallas_call (per-batch y kept in VMEM)
# ---------------------------------------------------------------------------

def _fused_group_block_kernel(x_ref,
                              w0a, w0b, b0, w1a, w1b, w1c, b1,
                              wla, wlb, wlc, bl,
                              ca_w1t, ca_b1, ca_w2, ca_b2,
                              out_ref,
                              y_scr, acc_ref, gate_ref,
                              *, dg1, dg2, tile_s, s_true, needs_mask, inv_s):
    p = pl.program_id(1)   # phase: 0 = conv chain + pooled sum, 1 = residual
    s = pl.program_id(2)   # spatial tile
    n_s = pl.num_programs(2)
    conv_w = (w0a, w0b, b0, w1a, w1b, w1c, b1, wla, wlb, wlc, bl)

    @pl.when(p == 0)
    def _phase0():
        y = _conv_chain(x_ref[0].astype(jnp.float32), conv_w, dg1, dg2)
        y_scr[s] = y                                    # keep y on-chip
        _accum_pooled_sum(acc_ref, y, s, n_s, tile_s, s_true, needs_mask)

    @pl.when(jnp.logical_and(p == 1, s == 0))
    def _gate():
        # CALayer conv_du on the pooled mean: C -> C//red (ReLU) -> C (sigmoid)
        # computed with lane/sublane broadcasts + reductions (no tiny matmuls).
        pooled = acc_ref[...] * inv_s                                    # (C,1)
        h = jnp.sum(ca_w1t[...] * pooled, axis=0, keepdims=True) + ca_b1[...]
        h = jnp.maximum(h, 0.0)                                          # (1,cr)
        g = jnp.sum(ca_w2[...] * h, axis=1, keepdims=True) + ca_b2[...]  # (C,1)
        gate_ref[...] = 1.0 / (1.0 + jnp.exp(-g))

    @pl.when(p == 1)
    def _phase1():
        out_ref[0] = (x_ref[0].astype(jnp.float32)
                      + y_scr[s] * gate_ref[...]).astype(out_ref.dtype)


def _group_block_fused_call(x, conv_w, ca_w, dim_groups, *, tile_s, s_true,
                            vmem_limit):
    B, C, S = x.shape
    _, dg1, dg2 = dim_groups
    n_s = -(-S // tile_s)
    needs_mask = (S % tile_s) != 0

    kern = functools.partial(
        _fused_group_block_kernel, dg1=dg1, dg2=dg2, tile_s=tile_s,
        s_true=s_true, needs_mask=needs_mask, inv_s=1.0 / float(s_true))

    weights = list(conv_w) + list(ca_w)
    w_specs = [pl.BlockSpec(w.shape, lambda b, p, s: (0, 0)) for w in weights]

    return pl.pallas_call(
        kern,
        out_shape=jax.ShapeDtypeStruct((B, C, S), x.dtype),
        grid_spec=pltpu.PrefetchScalarGridSpec(
            num_scalar_prefetch=0,
            grid=(B, 2, n_s),                      # batch | phase | spatial
            in_specs=[pl.BlockSpec((1, C, tile_s), lambda b, p, s: (b, 0, s))]
                     + w_specs,
            # phase 0 parks the output block at (b,0); phase 1 walks it over s,
            # so every output block is written exactly once (during phase 1).
            out_specs=pl.BlockSpec((1, C, tile_s),
                                   lambda b, p, s: (b, 0, s * p)),
            scratch_shapes=[
                pltpu.VMEM((n_s, C, tile_s), jnp.float32),   # y (one batch item)
                pltpu.VMEM((C, 1), jnp.float32),             # pooled-sum acc
                pltpu.VMEM((C, 1), jnp.float32),             # sigmoid gate
            ],
        ),
        compiler_params=pltpu.CompilerParams(
            dimension_semantics=("parallel", "arbitrary", "arbitrary"),
            vmem_limit_bytes=vmem_limit),
    )(x, *weights)


# ---------------------------------------------------------------------------
# Two-pass fallback (large volumes): conv chain -> HBM y, then gated residual
# ---------------------------------------------------------------------------

def _pass1_kernel(x_ref,
                  w0a, w0b, b0, w1a, w1b, w1c, b1, wla, wlb, wlc, bl,
                  y_ref, psum_ref, acc_ref,
                  *, dg1, dg2, tile_s, s_true, needs_mask):
    s = pl.program_id(1)
    n_s = pl.num_programs(1)
    conv_w = (w0a, w0b, b0, w1a, w1b, w1c, b1, wla, wlb, wlc, bl)

    y = _conv_chain(x_ref[0].astype(jnp.float32), conv_w, dg1, dg2)
    y_ref[0] = y.astype(y_ref.dtype)
    _accum_pooled_sum(acc_ref, y, s, n_s, tile_s, s_true, needs_mask)

    @pl.when(s == n_s - 1)
    def _():
        psum_ref[0] = acc_ref[...]


def _pass1_call(x, conv_w, dim_groups, *, tile_s, s_true, vmem_limit):
    B, C, S = x.shape
    _, dg1, dg2 = dim_groups
    n_s = -(-S // tile_s)
    needs_mask = (S % tile_s) != 0

    kern = functools.partial(_pass1_kernel, dg1=dg1, dg2=dg2, tile_s=tile_s,
                             s_true=s_true, needs_mask=needs_mask)
    w_specs = [pl.BlockSpec(w.shape, lambda b, s: (0, 0)) for w in conv_w]

    return pl.pallas_call(
        kern,
        out_shape=(jax.ShapeDtypeStruct((B, C, S), x.dtype),
                   jax.ShapeDtypeStruct((B, C, 1), jnp.float32)),
        grid_spec=pltpu.PrefetchScalarGridSpec(
            num_scalar_prefetch=0,
            grid=(B, n_s),
            in_specs=[pl.BlockSpec((1, C, tile_s), lambda b, s: (b, 0, s))]
                     + w_specs,
            out_specs=[pl.BlockSpec((1, C, tile_s), lambda b, s: (b, 0, s)),
                       pl.BlockSpec((1, C, 1), lambda b, s: (b, 0, 0))],
            scratch_shapes=[pltpu.VMEM((C, 1), jnp.float32)],
        ),
        compiler_params=pltpu.CompilerParams(
            dimension_semantics=("parallel", "arbitrary"),
            vmem_limit_bytes=vmem_limit),
    )(x, *conv_w)


def _pass2_kernel(y_ref, sc_ref, g_ref, o_ref):
    o_ref[0] = (sc_ref[0].astype(jnp.float32)
                + y_ref[0].astype(jnp.float32) * g_ref[0]).astype(o_ref.dtype)


def _pass2_call(y, shortcut, gate, *, tile_s, vmem_limit):
    B, C, S = y.shape
    n_s = -(-S // tile_s)
    return pl.pallas_call(
        _pass2_kernel,
        out_shape=jax.ShapeDtypeStruct((B, C, S), y.dtype),
        grid_spec=pltpu.PrefetchScalarGridSpec(
            num_scalar_prefetch=0,
            grid=(B, n_s),
            in_specs=[pl.BlockSpec((1, C, tile_s), lambda b, s: (b, 0, s)),
                      pl.BlockSpec((1, C, tile_s), lambda b, s: (b, 0, s)),
                      pl.BlockSpec((1, C, 1), lambda b, s: (b, 0, 0))],
            out_specs=pl.BlockSpec((1, C, tile_s), lambda b, s: (b, 0, s)),
        ),
        # y is dead after this call -> reuse its HBM buffer for the output.
        input_output_aliases={0: 0},
        compiler_params=pltpu.CompilerParams(
            dimension_semantics=("parallel", "parallel"),
            vmem_limit_bytes=vmem_limit),
    )(y, shortcut, gate)


# ---------------------------------------------------------------------------
# Host-side parameter prep, tiling, orchestration
# ---------------------------------------------------------------------------

def _split_conv_params(params, dim_groups):
    """Pre-split conv weights along Cin (trace-time, zero runtime cost) so the
    kernels never need an in-VMEM channel concat."""
    dg0, dg1, dg2 = dim_groups
    C = dg0 + dg1 + dg2
    f32 = lambda a: a.astype(jnp.float32)
    w0, w1, wl = f32(params["conv0_w"]), f32(params["conv1_w"]), f32(params["last_w"])
    return [
        w0[:, :dg2], w0[:, dg2:], f32(params["conv0_b"]).reshape(dg1, 1),
        w1[:, :dg2], w1[:, dg2:dg2 + dg1], w1[:, dg2 + dg1:],
        f32(params["conv1_b"]).reshape(dg0, 1),
        wl[:, :dg2], wl[:, dg2:dg2 + dg1], wl[:, dg2 + dg1:],
        f32(params["last_b"]).reshape(C, 1),
    ]


def _ca_params_for_kernel(params):
    f32 = lambda a: a.astype(jnp.float32)
    w1, w2 = f32(params["ca_w1"]), f32(params["ca_w2"])     # (cr, C), (C, cr)
    cr, C = w1.shape[0], w2.shape[0]
    return [w1.T, f32(params["ca_b1"]).reshape(1, cr),
            w2, f32(params["ca_b2"]).reshape(C, 1)]


def _vmem_limit_bytes():
    try:
        cap = int(pltpu.get_tpu_info().vmem_capacity_bytes)
    except Exception:
        cap = 64 << 20            # conservative fallback (v7x physical VMEM)
    return max(32 << 20, min(cap * 3 // 4, 96 << 20))


def _pick_tile_s(S, C, *, vmem_budget_bytes, max_tile=8192):
    # Per-lane footprint: ~4 pipelined (C,) f32 columns (x-in x2, out x2) plus
    # ~8 live (C,) f32 intermediates of the conv chain.
    per_lane = C * 4 * 12
    t = (vmem_budget_bytes // per_lane) // 128 * 128
    t = max(128, min(t, max(128, max_tile // 128 * 128)))
    s_ceil = -(-S // 128) * 128
    t = min(t, s_ceil)
    # Prefer a tile that divides S exactly (no partial last block, no masking).
    if S % 128 == 0:
        d = t
        while d >= 128 and S % d:
            d -= 128
        if d >= 128:
            t = d
    return t


def group_block_forward(x_ncdhw, params, dim_groups, *, force_two_pass=False,
                        max_tile_s=None, stream_dtype=None):
    B, C, F, H, W = x_ncdhw.shape
    dg0, dg1, dg2 = dim_groups
    assert C == dg0 + dg1 + dg2, "input channels do not match."
    S = F * H * W

    # NCDHW -> (B, C, S): free reshape, channels-first (spatial on lanes).
    x = x_ncdhw.reshape(B, C, S)
    if stream_dtype is not None and x.dtype != stream_dtype:
        x = x.astype(stream_dtype)    # bf16 streaming knob for v6e / v7x

    vmem_limit = _vmem_limit_bytes()
    tile_s = _pick_tile_s(S, C, vmem_budget_bytes=vmem_limit // 2,
                          max_tile=max_tile_s if max_tile_s else 8192)
    n_s = -(-S // tile_s)

    conv_w = _split_conv_params(params, dim_groups)

    # Fuse everything into one kernel when one batch-item's y plus the
    # streaming working set fits comfortably inside the VMEM limit.
    y_scr_bytes = n_s * tile_s * C * 4
    fits = (y_scr_bytes + 12 * C * tile_s * 4) <= (vmem_limit * 6) // 10

    if fits and not force_two_pass:
        ca_w = _ca_params_for_kernel(params)
        out = _group_block_fused_call(x, conv_w, ca_w, dim_groups,
                                      tile_s=tile_s, s_true=S,
                                      vmem_limit=vmem_limit)
    else:
        y, psum = _pass1_call(x, conv_w, dim_groups, tile_s=tile_s, s_true=S,
                              vmem_limit=vmem_limit)
        # CALayer conv_du on the (B, C) pooled means — tiny, plain jnp here.
        pooled = psum[:, :, 0] / jnp.float32(S)
        h = jnp.maximum(pooled @ params["ca_w1"].T + params["ca_b1"], 0.0)
        gate = jax.nn.sigmoid(h @ params["ca_w2"].T + params["ca_b2"])
        out = _pass2_call(y, x, gate[:, :, None].astype(jnp.float32),
                          tile_s=tile_s, vmem_limit=vmem_limit)

    return out.reshape(B, C, F, H, W)


# ---------------------------------------------------------------------------
# Parameters + pure-jnp reference (for a sanity check)
# ---------------------------------------------------------------------------

def init_params(key, dim, dim_groups, reduction=16):
    dg0, dg1, dg2 = dim_groups
    cr = max(1, dim // reduction)
    shapes = {
        # Conv weights stored (Cout, Cin) == PyTorch Conv3d weight[..., 0, 0, 0].
        "conv0_w": (dg1, dg2 + dg1), "conv0_b": (dg1,),
        "conv1_w": (dg0, dg2 + dg1 + dg0), "conv1_b": (dg0,),
        "last_w": (dim, dim), "last_b": (dim,),
        "ca_w1": (cr, dim), "ca_b1": (cr,),
        "ca_w2": (dim, cr), "ca_b2": (dim,),
    }
    params = {}
    keys = jax.random.split(key, len(shapes))
    for k, (name, shp) in zip(keys, sorted(shapes.items())):
        params[name] = 0.05 * jax.random.normal(k, shp, jnp.float32)
    return params


def group_block_reference(x_ncdhw, params, dim_groups):
    B, C, F, H, W = x_ncdhw.shape
    dg0, dg1, dg2 = dim_groups
    S = F * H * W
    x = x_ncdhw.reshape(B, C, S)
    in0, in1, in2 = x[:, :dg2], x[:, dg2:dg2 + dg1], x[:, dg2 + dg1:]

    def conv(w, b, z):
        return jnp.einsum("oc,bcs->bos", w, z) + b[None, :, None]

    def lrelu(z):
        return jnp.where(z >= 0, z, _NEG_SLOPE * z)

    out0 = in0                                     # ViTblock treated as identity
    out1 = lrelu(conv(params["conv0_w"], params["conv0_b"],
                      jnp.concatenate([out0, in1], axis=1)))
    out2 = lrelu(conv(params["conv1_w"], params["conv1_b"],
                      jnp.concatenate([out0, out1, in2], axis=1)))
    y = conv(params["last_w"], params["last_b"],
             jnp.concatenate([out0, out1, out2], axis=1))
    pooled = y.mean(axis=2)
    h = jnp.maximum(pooled @ params["ca_w1"].T + params["ca_b1"], 0.0)
    gate = jax.nn.sigmoid(h @ params["ca_w2"].T + params["ca_b2"])
    out = x + y * gate[:, :, None]
    return out.reshape(B, C, F, H, W)


# ---------------------------------------------------------------------------

if __name__ == "__main__":
    key = jax.random.PRNGKey(0)
    kx, kp, kx2 = jax.random.split(key, 3)

    dim_groups = [8, 8, 16]
    dim = sum(dim_groups)
    params = init_params(kp, dim, dim_groups, reduction=16)

    # Case 1: divisible spatial extent -> single fused kernel path.
    B, F, H, W = 2, 4, 8, 8
    x = jax.random.normal(kx, (B, dim, F, H, W), jnp.float32)
    fwd = jax.jit(functools.partial(group_block_forward, dim_groups=dim_groups))
    out = jax.block_until_ready(fwd(x, params))
    assert out.shape == x.shape and out.dtype == x.dtype
    ref = group_block_reference(x, params, dim_groups)
    err = float(jnp.max(jnp.abs(out - ref)))
    assert err < 1e-2, f"fused path mismatch: max abs err {err}"

    # Case 2: ragged spatial extent (S = 320), multi-tile + last-tile mask,
    # still the fused single-kernel path.
    x2 = jax.random.normal(kx2, (1, dim, 5, 8, 8), jnp.float32)
    fwd2 = jax.jit(functools.partial(group_block_forward,
                                     dim_groups=dim_groups, max_tile_s=128))
    out2 = jax.block_until_ready(fwd2(x2, params))
    ref2 = group_block_reference(x2, params, dim_groups)
    err2 = float(jnp.max(jnp.abs(out2 - ref2)))
    assert err2 < 1e-2, f"fused ragged path mismatch: max abs err {err2}"

    # Case 3: two-pass fallback (large-volume path), same ragged shape.
    fwd3 = jax.jit(functools.partial(group_block_forward,
                                     dim_groups=dim_groups, max_tile_s=128,
                                     force_two_pass=True))
    out3 = jax.block_until_ready(fwd3(x2, params))
    err3 = float(jnp.max(jnp.abs(out3 - ref2)))
    assert err3 < 1e-2, f"two-pass path mismatch: max abs err {err3}"

    print("KERNEL_OK")
</pallas_src>

<mosaic_0001>
module attributes {stable_mosaic.version = 11 : i64} {
  func.func @_fused_group_block_kernel(%arg0: i32, %arg1: i32, %arg2: i32, %arg3: memref<1x32x256xf32, #tpu.memory_space<vmem>>, %arg4: memref<8x16xf32, #tpu.memory_space<vmem>>, %arg5: memref<8x8xf32, #tpu.memory_space<vmem>>, %arg6: memref<8x1xf32, #tpu.memory_space<vmem>>, %arg7: memref<8x16xf32, #tpu.memory_space<vmem>>, %arg8: memref<8x8xf32, #tpu.memory_space<vmem>>, %arg9: memref<8x8xf32, #tpu.memory_space<vmem>>, %arg10: memref<8x1xf32, #tpu.memory_space<vmem>>, %arg11: memref<32x16xf32, #tpu.memory_space<vmem>>, %arg12: memref<32x8xf32, #tpu.memory_space<vmem>>, %arg13: memref<32x8xf32, #tpu.memory_space<vmem>>, %arg14: memref<32x1xf32, #tpu.memory_space<vmem>>, %arg15: memref<32x2xf32, #tpu.memory_space<vmem>>, %arg16: memref<1x2xf32, #tpu.memory_space<vmem>>, %arg17: memref<32x2xf32, #tpu.memory_space<vmem>>, %arg18: memref<32x1xf32, #tpu.memory_space<vmem>>, %arg19: memref<1x32x256xf32, #tpu.memory_space<vmem>>, %arg20: memref<1x32x256xf32, #tpu.memory_space<vmem>>, %arg21: memref<32x1xf32, #tpu.memory_space<vmem>>, %arg22: memref<32x1xf32, #tpu.memory_space<vmem>>) attributes {dimension_semantics = [#tpu.dimension_semantics<parallel>, #tpu.dimension_semantics<arbitrary>, #tpu.dimension_semantics<arbitrary>], iteration_bounds = array<i64: 2, 2, 1>, scalar_prefetch = 0 : i64, scratch_operands = 3 : i64, tpu.core_type = #tpu.core_type<tc>, window_params = [{transform_indices = @transform_0, window_bounds = array<i64: 1, 32, 256>}, {pipeline_mode = #tpu.pipeline_mode<synchronous>, transform_indices = @transform_1, window_bounds = array<i64: 8, 16>}, {pipeline_mode = #tpu.pipeline_mode<synchronous>, transform_indices = @transform_2, window_bounds = array<i64: 8, 8>}, {pipeline_mode = #tpu.pipeline_mode<synchronous>, transform_indices = @transform_3, window_bounds = array<i64: 8, 1>}, {pipeline_mode = #tpu.pipeline_mode<synchronous>, transform_indices = @transform_4, window_bounds = array<i64: 8, 16>}, {pipeline_mode = #tpu.pipeline_mode<synchronous>, transform_indices = @transform_5, window_bounds = array<i64: 8, 8>}, {pipeline_mode = #tpu.pipeline_mode<synchronous>, transform_indices = @transform_6, window_bounds = array<i64: 8, 8>}, {pipeline_mode = #tpu.pipeline_mode<synchronous>, transform_indices = @transform_7, window_bounds = array<i64: 8, 1>}, {pipeline_mode = #tpu.pipeline_mode<synchronous>, transform_indices = @transform_8, window_bounds = array<i64: 32, 16>}, {pipeline_mode = #tpu.pipeline_mode<synchronous>, transform_indices = @transform_9, window_bounds = array<i64: 32, 8>}, {pipeline_mode = #tpu.pipeline_mode<synchronous>, transform_indices = @transform_10, window_bounds = array<i64: 32, 8>}, {pipeline_mode = #tpu.pipeline_mode<synchronous>, transform_indices = @transform_11, window_bounds = array<i64: 32, 1>}, {pipeline_mode = #tpu.pipeline_mode<synchronous>, transform_indices = @transform_12, window_bounds = array<i64: 32, 2>}, {pipeline_mode = #tpu.pipeline_mode<synchronous>, transform_indices = @transform_13, window_bounds = array<i64: 1, 2>}, {pipeline_mode = #tpu.pipeline_mode<synchronous>, transform_indices = @transform_14, window_bounds = array<i64: 32, 2>}, {pipeline_mode = #tpu.pipeline_mode<synchronous>, transform_indices = @transform_15, window_bounds = array<i64: 32, 1>}, {transform_indices = @transform_16, window_bounds = array<i64: 1, 32, 256>}]} {
    %c0_i32 = arith.constant 0 : i32
    %0 = arith.cmpi eq, %arg1, %c0_i32 : i32
    %1 = arith.extui %0 : i1 to i32
    %c0_i32_0 = arith.constant 0 : i32
    %2 = arith.cmpi ne, %1, %c0_i32_0 : i32
    scf.if %2 {
      %c0 = arith.constant 0 : index
      %c0_5 = arith.constant 0 : index
      %c0_6 = arith.constant 0 : index
      %11 = vector.load %arg3[%c0, %c0_5, %c0_6] : memref<1x32x256xf32, #tpu.memory_space<vmem>>, vector<1x32x256xf32>
      %12 = vector.shape_cast %11 : vector<1x32x256xf32> to vector<32x256xf32>
      %13 = vector.extract_strided_slice %12 {offsets = [0, 0], sizes = [16, 256], strides = [1, 1]} : vector<32x256xf32> to vector<16x256xf32>
      %14 = vector.extract_strided_slice %12 {offsets = [16, 0], sizes = [8, 256], strides = [1, 1]} : vector<32x256xf32> to vector<8x256xf32>
      %15 = vector.extract_strided_slice %12 {offsets = [24, 0], sizes = [8, 256], strides = [1, 1]} : vector<32x256xf32> to vector<8x256xf32>
      %c0_7 = arith.constant 0 : index
      %c0_8 = arith.constant 0 : index
      %16 = vector.load %arg4[%c0_7, %c0_8] : memref<8x16xf32, #tpu.memory_space<vmem>>, vector<8x16xf32>
      %cst = arith.constant dense<0.000000e+00> : vector<8x256xf32>
      %17 = tpu.matmul %16, %13, %cst {dimension_numbers = #tpu.dot_dimension_numbers<[1], [0], [0], [1], [0, 0, 1, 1], [], []>} : vector<8x16xf32>, vector<16x256xf32>, vector<8x256xf32> -> vector<8x256xf32>
      %c0_9 = arith.constant 0 : index
      %c0_10 = arith.constant 0 : index
      %18 = vector.load %arg5[%c0_9, %c0_10] : memref<8x8xf32, #tpu.memory_space<vmem>>, vector<8x8xf32>
      %cst_11 = arith.constant dense<0.000000e+00> : vector<8x256xf32>
      %19 = tpu.matmul %18, %14, %cst_11 {dimension_numbers = #tpu.dot_dimension_numbers<[1], [0], [0], [1], [0, 0, 1, 1], [], []>} : vector<8x8xf32>, vector<8x256xf32>, vector<8x256xf32> -> vector<8x256xf32>
      %20 = arith.addf %17, %19 : vector<8x256xf32>
      %c0_12 = arith.constant 0 : index
      %c0_13 = arith.constant 0 : index
      %21 = vector.load %arg6[%c0_12, %c0_13] : memref<8x1xf32, #tpu.memory_space<vmem>>, vector<8x1xf32>
      %22 = vector.broadcast %21 : vector<8x1xf32> to vector<8x256xf32>
      %23 = arith.addf %20, %22 : vector<8x256xf32>
      %cst_14 = arith.constant 0.000000e+00 : f32
      %24 = vector.broadcast %cst_14 : f32 to vector<8x256xf32>
      %25 = arith.cmpf oge, %23, %24 : vector<8x256xf32>
      %cst_15 = arith.constant 0.00999999977 : f32
      %26 = vector.broadcast %cst_15 : f32 to vector<8x256xf32>
      %27 = arith.mulf %26, %23 : vector<8x256xf32>
      %28 = arith.select %25, %23, %27 : vector<8x256xi1>, vector<8x256xf32>
      %c0_16 = arith.constant 0 : index
      %c0_17 = arith.constant 0 : index
      %29 = vector.load %arg7[%c0_16, %c0_17] : memref<8x16xf32, #tpu.memory_space<vmem>>, vector<8x16xf32>
      %cst_18 = arith.constant dense<0.000000e+00> : vector<8x256xf32>
      %30 = tpu.matmul %29, %13, %cst_18 {dimension_numbers = #tpu.dot_dimension_numbers<[1], [0], [0], [1], [0, 0, 1, 1], [], []>} : vector<8x16xf32>, vector<16x256xf32>, vector<8x256xf32> -> vector<8x256xf32>
      %c0_19 = arith.constant 0 : index
      %c0_20 = arith.constant 0 : index
      %31 = vector.load %arg8[%c0_19, %c0_20] : memref<8x8xf32, #tpu.memory_space<vmem>>, vector<8x8xf32>
      %cst_21 = arith.constant dense<0.000000e+00> : vector<8x256xf32>
      %32 = tpu.matmul %31, %28, %cst_21 {dimension_numbers = #tpu.dot_dimension_numbers<[1], [0], [0], [1], [0, 0, 1, 1], [], []>} : vector<8x8xf32>, vector<8x256xf32>, vector<8x256xf32> -> vector<8x256xf32>
      %33 = arith.addf %30, %32 : vector<8x256xf32>
      %c0_22 = arith.constant 0 : index
      %c0_23 = arith.constant 0 : index
      %34 = vector.load %arg9[%c0_22, %c0_23] : memref<8x8xf32, #tpu.memory_space<vmem>>, vector<8x8xf32>
      %cst_24 = arith.constant dense<0.000000e+00> : vector<8x256xf32>
      %35 = tpu.matmul %34, %15, %cst_24 {dimension_numbers = #tpu.dot_dimension_numbers<[1], [0], [0], [1], [0, 0, 1, 1], [], []>} : vector<8x8xf32>, vector<8x256xf32>, vector<8x256xf32> -> vector<8x256xf32>
      %36 = arith.addf %33, %35 : vector<8x256xf32>
      %c0_25 = arith.constant 0 : index
      %c0_26 = arith.constant 0 : index
      %37 = vector.load %arg10[%c0_25, %c0_26] : memref<8x1xf32, #tpu.memory_space<vmem>>, vector<8x1xf32>
      %38 = vector.broadcast %37 : vector<8x1xf32> to vector<8x256xf32>
      %39 = arith.addf %36, %38 : vector<8x256xf32>
      %cst_27 = arith.constant 0.000000e+00 : f32
      %40 = vector.broadcast %cst_27 : f32 to vector<8x256xf32>
      %41 = arith.cmpf oge, %39, %40 : vector<8x256xf32>
      %cst_28 = arith.constant 0.00999999977 : f32
      %42 = vector.broadcast %cst_28 : f32 to vector<8x256xf32>
      %43 = arith.mulf %42, %39 : vector<8x256xf32>
      %44 = arith.select %41, %39, %43 : vector<8x256xi1>, vector<8x256xf32>
      %c0_29 = arith.constant 0 : index
      %c0_30 = arith.constant 0 : index
      %45 = vector.load %arg11[%c0_29, %c0_30] : memref<32x16xf32, #tpu.memory_space<vmem>>, vector<32x16xf32>
      %cst_31 = arith.constant dense<0.000000e+00> : vector<32x256xf32>
      %46 = tpu.matmul %45, %13, %cst_31 {dimension_numbers = #tpu.dot_dimension_numbers<[1], [0], [0], [1], [0, 0, 1, 1], [], []>} : vector<32x16xf32>, vector<16x256xf32>, vector<32x256xf32> -> vector<32x256xf32>
      %c0_32 = arith.constant 0 : index
      %c0_33 = arith.constant 0 : index
      %47 = vector.load %arg12[%c0_32, %c0_33] : memref<32x8xf32, #tpu.memory_space<vmem>>, vector<32x8xf32>
      %cst_34 = arith.constant dense<0.000000e+00> : vector<32x256xf32>
      %48 = tpu.matmul %47, %28, %cst_34 {dimension_numbers = #tpu.dot_dimension_numbers<[1], [0], [0], [1], [0, 0, 1, 1], [], []>} : vector<32x8xf32>, vector<8x256xf32>, vector<32x256xf32> -> vector<32x256xf32>
      %49 = arith.addf %46, %48 : vector<32x256xf32>
      %c0_35 = arith.constant 0 : index
      %c0_36 = arith.constant 0 : index
      %50 = vector.load %arg13[%c0_35, %c0_36] : memref<32x8xf32, #tpu.memory_space<vmem>>, vector<32x8xf32>
      %cst_37 = arith.constant dense<0.000000e+00> : vector<32x256xf32>
      %51 = tpu.matmul %50, %44, %cst_37 {dimension_numbers = #tpu.dot_dimension_numbers<[1], [0], [0], [1], [0, 0, 1, 1], [], []>} : vector<32x8xf32>, vector<8x256xf32>, vector<32x256xf32> -> vector<32x256xf32>
      %52 = arith.addf %49, %51 : vector<32x256xf32>
      %c0_38 = arith.constant 0 : index
      %c0_39 = arith.constant 0 : index
      %53 = vector.load %arg14[%c0_38, %c0_39] : memref<32x1xf32, #tpu.memory_space<vmem>>, vector<32x1xf32>
      %54 = vector.broadcast %53 : vector<32x1xf32> to vector<32x256xf32>
      %55 = arith.addf %52, %54 : vector<32x256xf32>
      %56 = arith.index_cast %arg2 : i32 to index
      %c0_40 = arith.constant 0 : index
      %c0_41 = arith.constant 0 : index
      %57 = vector.load %arg20[%56, %c0_40, %c0_41] : memref<1x32x256xf32, #tpu.memory_space<vmem>>, vector<1x32x256xf32>
      %58 = vector.shape_cast %57 : vector<1x32x256xf32> to vector<32x256xf32>
      %59 = vector.shape_cast %55 : vector<32x256xf32> to vector<1x32x256xf32>
      tpu.vector_store %arg20[%56, %c0_40, %c0_41], %59 {strides = array<i32>} : memref<1x32x256xf32, #tpu.memory_space<vmem>>, vector<1x32x256xf32>,
      %c0_i32_42 = arith.constant 0 : i32
      %60 = arith.cmpi eq, %arg2, %c0_i32_42 : i32
      %61 = arith.extui %60 : i1 to i32
      %c0_i32_43 = arith.constant 0 : i32
      %62 = arith.cmpi ne, %61, %c0_i32_43 : i32
      scf.if %62 {
        %cst_49 = arith.constant 0.000000e+00 : f32
        %68 = vector.broadcast %cst_49 : f32 to vector<32x1xf32>
        %c0_50 = arith.constant 0 : index
        %c0_51 = arith.constant 0 : index
        %69 = vector.load %arg21[%c0_50, %c0_51] : memref<32x1xf32, #tpu.memory_space<vmem>>, vector<32x1xf32>
        tpu.vector_store %arg21[%c0_50, %c0_51], %68 {strides = array<i32>} : memref<32x1xf32, #tpu.memory_space<vmem>>, vector<32x1xf32>,
      } else {
      }
      %c0_44 = arith.constant 0 : index
      %c0_45 = arith.constant 0 : index
      %63 = vector.load %arg21[%c0_44, %c0_45] : memref<32x1xf32, #tpu.memory_space<vmem>>, vector<32x1xf32>
      %cst_46 = arith.constant dense<0.000000e+00> : vector<32xf32>
      %64 = vector.multi_reduction <add>, %55, %cst_46 [1] : vector<32x256xf32> to vector<32xf32>
      %65 = vector.shape_cast %64 : vector<32xf32> to vector<32x1xf32>
      %66 = arith.addf %63, %65 : vector<32x1xf32>
      %c0_47 = arith.constant 0 : index
      %c0_48 = arith.constant 0 : index
      %67 = vector.load %arg21[%c0_47, %c0_48] : memref<32x1xf32, #tpu.memory_space<vmem>>, vector<32x1xf32>
      tpu.vector_store %arg21[%c0_47, %c0_48], %66 {strides = array<i32>} : memref<32x1xf32, #tpu.memory_space<vmem>>, vector<32x1xf32>,
    } else {
    }
    %c1_i32 = arith.constant 1 : i32
    %3 = arith.cmpi eq, %arg1, %c1_i32 : i32
    %c0_i32_1 = arith.constant 0 : i32
    %4 = arith.cmpi eq, %arg2, %c0_i32_1 : i32
    %5 = arith.andi %3, %4 : i1
    %6 = arith.extui %5 : i1 to i32
    %c0_i32_2 = arith.constant 0 : i32
    %7 = arith.cmpi ne, %6, %c0_i32_2 : i32
    scf.if %7 {
      %c0 = arith.constant 0 : index
      %c0_5 = arith.constant 0 : index
      %11 = vector.load %arg21[%c0, %c0_5] : memref<32x1xf32, #tpu.memory_space<vmem>>, vector<32x1xf32>
      %cst = arith.constant 3.906250e-03 : f32
      %12 = vector.broadcast %cst : f32 to vector<32x1xf32>
      %13 = arith.mulf %11, %12 : vector<32x1xf32>
      %c0_6 = arith.constant 0 : index
      %c0_7 = arith.constant 0 : index
      %14 = vector.load %arg15[%c0_6, %c0_7] : memref<32x2xf32, #tpu.memory_space<vmem>>, vector<32x2xf32>
      %15 = vector.broadcast %13 : vector<32x1xf32> to vector<32x2xf32>
      %16 = arith.mulf %14, %15 : vector<32x2xf32>
      %cst_8 = arith.constant dense<0.000000e+00> : vector<2xf32>
      %17 = vector.multi_reduction <add>, %16, %cst_8 [0] : vector<32x2xf32> to vector<2xf32>
      %18 = vector.shape_cast %17 : vector<2xf32> to vector<1x2xf32>
      %c0_9 = arith.constant 0 : index
      %c0_10 = arith.constant 0 : index
      %19 = vector.load %arg16[%c0_9, %c0_10] : memref<1x2xf32, #tpu.memory_space<vmem>>, vector<1x2xf32>
      %20 = arith.addf %18, %19 : vector<1x2xf32>
      %cst_11 = arith.constant 0.000000e+00 : f32
      %21 = vector.broadcast %cst_11 : f32 to vector<1x2xf32>
      %22 = arith.maximumf %20, %21 : vector<1x2xf32>
      %c0_12 = arith.constant 0 : index
      %c0_13 = arith.constant 0 : index
      %23 = vector.load %arg17[%c0_12, %c0_13] : memref<32x2xf32, #tpu.memory_space<vmem>>, vector<32x2xf32>
      %24 = vector.broadcast %22 : vector<1x2xf32> to vector<32x2xf32>
      %25 = arith.mulf %23, %24 : vector<32x2xf32>
      %cst_14 = arith.constant dense<0.000000e+00> : vector<32xf32>
      %26 = vector.multi_reduction <add>, %25, %cst_14 [1] : vector<32x2xf32> to vector<32xf32>
      %27 = vector.shape_cast %26 : vector<32xf32> to vector<32x1xf32>
      %c0_15 = arith.constant 0 : index
      %c0_16 = arith.constant 0 : index
      %28 = vector.load %arg18[%c0_15, %c0_16] : memref<32x1xf32, #tpu.memory_space<vmem>>, vector<32x1xf32>
      %29 = arith.addf %27, %28 : vector<32x1xf32>
      %cst_17 = arith.constant 0.000000e+00 : f32
      %30 = vector.broadcast %cst_17 : f32 to vector<32x1xf32>
      %31 = arith.subf %30, %29 : vector<32x1xf32>
      %32 = math.exp %31 : vector<32x1xf32>
      %cst_18 = arith.constant 1.000000e+00 : f32
      %33 = vector.broadcast %cst_18 : f32 to vector<32x1xf32>
      %34 = arith.addf %33, %32 : vector<32x1xf32>
      %cst_19 = arith.constant 1.000000e+00 : f32
      %35 = vector.broadcast %cst_19 : f32 to vector<32x1xf32>
      %36 = arith.divf %35, %34 : vector<32x1xf32>
      %c0_20 = arith.constant 0 : index
      %c0_21 = arith.constant 0 : index
      %37 = vector.load %arg22[%c0_20, %c0_21] : memref<32x1xf32, #tpu.memory_space<vmem>>, vector<32x1xf32>
      tpu.vector_store %arg22[%c0_20, %c0_21], %36 {strides = array<i32>} : memref<32x1xf32, #tpu.memory_space<vmem>>, vector<32x1xf32>,
    } else {
    }
    %c1_i32_3 = arith.constant 1 : i32
    %8 = arith.cmpi eq, %arg1, %c1_i32_3 : i32
    %9 = arith.extui %8 : i1 to i32
    %c0_i32_4 = arith.constant 0 : i32
    %10 = arith.cmpi ne, %9, %c0_i32_4 : i32
    scf.if %10 {
      %c0 = arith.constant 0 : index
      %c0_5 = arith.constant 0 : index
      %c0_6 = arith.constant 0 : index
      %11 = vector.load %arg3[%c0, %c0_5, %c0_6] : memref<1x32x256xf32, #tpu.memory_space<vmem>>, vector<1x32x256xf32>
      %12 = vector.shape_cast %11 : vector<1x32x256xf32> to vector<32x256xf32>
      %13 = arith.index_cast %arg2 : i32 to index
      %c0_7 = arith.constant 0 : index
      %c0_8 = arith.constant 0 : index
      %14 = vector.load %arg20[%13, %c0_7, %c0_8] : memref<1x32x256xf32, #tpu.memory_space<vmem>>, vector<1x32x256xf32>
      %15 = vector.shape_cast %14 : vector<1x32x256xf32> to vector<32x256xf32>
      %c0_9 = arith.constant 0 : index
      %c0_10 = arith.constant 0 : index
      %16 = vector.load %arg22[%c0_9, %c0_10] : memref<32x1xf32, #tpu.memory_space<vmem>>, vector<32x1xf32>
      %17 = vector.broadcast %16 : vector<32x1xf32> to vector<32x256xf32>
      %18 = arith.mulf %15, %17 : vector<32x256xf32>
      %19 = arith.addf %12, %18 : vector<32x256xf32>
      %c0_11 = arith.constant 0 : index
      %c0_12 = arith.constant 0 : index
      %c0_13 = arith.constant 0 : index
      %20 = vector.load %arg19[%c0_11, %c0_12, %c0_13] : memref<1x32x256xf32, #tpu.memory_space<vmem>>, vector<1x32x256xf32>
      %21 = vector.shape_cast %20 : vector<1x32x256xf32> to vector<32x256xf32>
      %22 = vector.shape_cast %19 : vector<32x256xf32> to vector<1x32x256xf32>
      tpu.vector_store %arg19[%c0_11, %c0_12, %c0_13], %22 {strides = array<i32>} : memref<1x32x256xf32, #tpu.memory_space<vmem>>, vector<1x32x256xf32>,
    } else {
    }
    return
  }
  func.func @transform_0(%arg0: i32, %arg1: i32, %arg2: i32) -> (i32, i32, i32) {
    %c0_i32 = arith.constant 0 : i32
    %c0_i32_0 = arith.constant 0 : i32
    return %arg0, %c0_i32, %arg2 : i32, i32, i32
  }
  func.func @transform_1(%arg0: i32, %arg1: i32, %arg2: i32) -> (i32, i32) {
    %c0_i32 = arith.constant 0 : i32
    %c0_i32_0 = arith.constant 0 : i32
    %c0_i32_1 = arith.constant 0 : i32
    return %c0_i32, %c0_i32_0 : i32, i32
  }
  func.func @transform_2(%arg0: i32, %arg1: i32, %arg2: i32) -> (i32, i32) {
    %c0_i32 = arith.constant 0 : i32
    %c0_i32_0 = arith.constant 0 : i32
    %c0_i32_1 = arith.constant 0 : i32
    return %c0_i32, %c0_i32_0 : i32, i32
  }
  func.func @transform_3(%arg0: i32, %arg1: i32, %arg2: i32) -> (i32, i32) {
    %c0_i32 = arith.constant 0 : i32
    %c0_i32_0 = arith.constant 0 : i32
    %c0_i32_1 = arith.constant 0 : i32
    return %c0_i32, %c0_i32_0 : i32, i32
  }
  func.func @transform_4(%arg0: i32, %arg1: i32, %arg2: i32) -> (i32, i32) {
    %c0_i32 = arith.constant 0 : i32
    %c0_i32_0 = arith.constant 0 : i32
    %c0_i32_1 = arith.constant 0 : i32
    return %c0_i32, %c0_i32_0 : i32, i32
  }
  func.func @transform_5(%arg0: i32, %arg1: i32, %arg2: i32) -> (i32, i32) {
    %c0_i32 = arith.constant 0 : i32
    %c0_i32_0 = arith.constant 0 : i32
    %c0_i32_1 = arith.constant 0 : i32
    return %c0_i32, %c0_i32_0 : i32, i32
  }
  func.func @transform_6(%arg0: i32, %arg1: i32, %arg2: i32) -> (i32, i32) {
    %c0_i32 = arith.constant 0 : i32
    %c0_i32_0 = arith.constant 0 : i32
    %c0_i32_1 = arith.constant 0 : i32
    return %c0_i32, %c0_i32_0 : i32, i32
  }
  func.func @transform_7(%arg0: i32, %arg1: i32, %arg2: i32) -> (i32, i32) {
    %c0_i32 = arith.constant 0 : i32
    %c0_i32_0 = arith.constant 0 : i32
    %c0_i32_1 = arith.constant 0 : i32
    return %c0_i32, %c0_i32_0 : i32, i32
  }
  func.func @transform_8(%arg0: i32, %arg1: i32, %arg2: i32) -> (i32, i32) {
    %c0_i32 = arith.constant 0 : i32
    %c0_i32_0 = arith.constant 0 : i32
    %c0_i32_1 = arith.constant 0 : i32
    return %c0_i32, %c0_i32_0 : i32, i32
  }
  func.func @transform_9(%arg0: i32, %arg1: i32, %arg2: i32) -> (i32, i32) {
    %c0_i32 = arith.constant 0 : i32
    %c0_i32_0 = arith.constant 0 : i32
    %c0_i32_1 = arith.constant 0 : i32
    return %c0_i32, %c0_i32_0 : i32, i32
  }
  func.func @transform_10(%arg0: i32, %arg1: i32, %arg2: i32) -> (i32, i32) {
    %c0_i32 = arith.constant 0 : i32
    %c0_i32_0 = arith.constant 0 : i32
    %c0_i32_1 = arith.constant 0 : i32
    return %c0_i32, %c0_i32_0 : i32, i32
  }
  func.func @transform_11(%arg0: i32, %arg1: i32, %arg2: i32) -> (i32, i32) {
    %c0_i32 = arith.constant 0 : i32
    %c0_i32_0 = arith.constant 0 : i32
    %c0_i32_1 = arith.constant 0 : i32
    return %c0_i32, %c0_i32_0 : i32, i32
  }
  func.func @transform_12(%arg0: i32, %arg1: i32, %arg2: i32) -> (i32, i32) {
    %c0_i32 = arith.constant 0 : i32
    %c0_i32_0 = arith.constant 0 : i32
    %c0_i32_1 = arith.constant 0 : i32
    return %c0_i32, %c0_i32_0 : i32, i32
  }
  func.func @transform_13(%arg0: i32, %arg1: i32, %arg2: i32) -> (i32, i32) {
    %c0_i32 = arith.constant 0 : i32
    %c0_i32_0 = arith.constant 0 : i32
    %c0_i32_1 = arith.constant 0 : i32
    return %c0_i32, %c0_i32_0 : i32, i32
  }
  func.func @transform_14(%arg0: i32, %arg1: i32, %arg2: i32) -> (i32, i32) {
    %c0_i32 = arith.constant 0 : i32
    %c0_i32_0 = arith.constant 0 : i32
    %c0_i32_1 = arith.constant 0 : i32
    return %c0_i32, %c0_i32_0 : i32, i32
  }
  func.func @transform_15(%arg0: i32, %arg1: i32, %arg2: i32) -> (i32, i32) {
    %c0_i32 = arith.constant 0 : i32
    %c0_i32_0 = arith.constant 0 : i32
    %c0_i32_1 = arith.constant 0 : i32
    return %c0_i32, %c0_i32_0 : i32, i32
  }
  func.func @transform_16(%arg0: i32, %arg1: i32, %arg2: i32) -> (i32, i32, i32) {
    %0 = arith.muli %arg2, %arg1 : i32
    %c0_i32 = arith.constant 0 : i32
    %c0_i32_0 = arith.constant 0 : i32
    return %arg0, %c0_i32, %0 : i32, i32, i32
  }
}

</mosaic_0001>

<bundles_post_ra>
// kernel: group_block_forward.1
= control target key start
LH: loop header
LB: loop body
LE: loop exit
PB: predicated region body
PF: predicated region fallthrough
CT: control target
= control target key end

     0   :  { %s1730_s21 = smov 0   ;;  %s1732_s22 = smov 0   ;;  %s1976_s0 = inlined_call_operand.vmem [shape: f32[2,32,256], index: 0, kind: input, shape index: {}]   ;;  %s1977_s1 = inlined_call_operand.vmem [shape: f32[8,16], index: 1, kind: input, shape index: {}]   ;;  %s1978_s2 = inlined_call_operand.vmem [shape: f32[8,8], index: 2, kind: input, shape index: {}]   ;;  %s1979_s3 = inlined_call_operand.vmem [shape: f32[8,1], index: 3, kind: input, shape index: {}]   ;;  %s1980_s4 = inlined_call_operand.vmem [shape: f32[8,16], index: 4, kind: input, shape index: {}]   ;;  %s1981_s5 = inlined_call_operand.vmem [shape: f32[8,8], index: 5, kind: input, shape index: {}]   ;;  %s1982_s6 = inlined_call_operand.vmem [shape: f32[8,8], index: 6, kind: input, shape index: {}]   ;;  %s1983_s7 = inlined_call_operand.vmem [shape: f32[8,1], index: 7, kind: input, shape index: {}]   ;;  %s1984_s8 = inlined_call_operand.vmem [shape: f32[32,16], index: 8, kind: input, shape index: {}]   ;;  %s1985_s9 = inlined_call_operand.vmem [shape: f32[32,8], index: 9, kind: input, shape index: {}]   ;;  %s1986_s10 = inlined_call_operand.vmem [shape: f32[32,8], index: 10, kind: input, shape index: {}]   ;;  %s1987_s11 = inlined_call_operand.vmem [shape: f32[32,1], index: 11, kind: input, shape index: {}]   ;;  %s1988_s12 = inlined_call_operand.vmem [shape: f32[32,2], index: 12, kind: input, shape index: {}]   ;;  %s1989_s13 = inlined_call_operand.vmem [shape: f32[1,2], index: 13, kind: input, shape index: {}]   ;;  %s1990_s14 = inlined_call_operand.vmem [shape: f32[32,2], index: 14, kind: input, shape index: {}]   ;;  %s1991_s15 = inlined_call_operand.vmem [shape: f32[32,1], index: 15, kind: input, shape index: {}]   ;;  %s1992_s16 = inlined_call_operand.vmem [shape: f32[2,32,256], index: 16, kind: output, shape index: {}]  }
   0x1   :  { %1993 = sst [smem:[#allocation5_spill]] %s1976_s0  ;;  %s1734_s23 = smov 0  }
   0x2   :  { %1994 = sst [smem:[#allocation6_spill]] %s1977_s1  ;;  %s1736_s24 = smov 0  }
   0x3   :  { %s1738_s25 = smov 0  }
   0x4 LB: > { %s41_s26 = sadd.s32 1, %s1631_s23  ;;  %s45_s27 = sadd.s32 1, %s1635_s24  ;;  %s1639_s25 = sphi %s1738_s25, %s26_s25   ;;  %s1635_s24 = sphi %s1736_s24, %s2000_s24   ;;  %s1631_s23 = sphi %s1734_s23, %s1999_s23   ;;  %s1627_s22 = sphi %s1732_s22, %s1998_s22   ;;  %s1623_s21 = sphi %s1730_s21, %s1997_s21  }
   0x5   : > { %p43_p0 = scmp.ge.s32.totalorder %s41_s26, 2  ;;  %p1487_p1 = scmp.ge.s32.totalorder %s1639_s25, 1 }
   0x6   : > { %p492_p2 = scmp.lt.s32.totalorder %s1639_s25, 5 }
   0x7   : > { %s2002_s26 = smov (%p43_p0, %s41_s26), 0  ;;  %s2004_s27 = smov (!%p43_p0, %s45_s27), %s1635_s24 }
   0x8   : > { %p493_p3 = pnand %p1487_p1, %p492_p2  ;;  %p47_p4 = scmp.ge.s32.totalorder %s2004_s27, 2 }
   0x9   : > { %p552_p5 = scmp.lt.s32.totalorder (!%p493_p3), %s1627_s22, 1  ;;  %s1995_s0 = sld [smem:[#allocation5_spill]] (!%p493_p3) }
   0xa   : > { %s2006_s27 = smov (%p47_p4, %s2004_s27), 0  ;;  %496 = sbr.rel (%p493_p3) target bundleno = 1053 (0x41d), region = 84 }
   0xb   : > { %p1492_p6 = scmp.ne.s32.totalorder (!%p493_p3), %s1623_s21, 0 }
   0xf   : > { %s2008_s22 = smov (!%p552_p5, %s1627_s22), 1  ;;  %576 = sbr.rel (%p1492_p6) target bundleno = 596 (0x254), region = 88 }
  0x10   : > { %s1531_s28 = sshll.u32 %s2008_s22, 6  ;;  %s1996_s1 = sld [smem:[#allocation6_spill]] (!%p1492_p6) }
  0x11   : > { %s1765_s17 = scalar_lea.vmem %s1995_s0, %s1531_s28  ;;  %s1770_s20 = scalar_lea.vmem %s1992_s16, %s1531_s28 }
  0x14   : > { %v581_v0 = vld [vmem:[%s1765_s17 + $0x20] sm:$0xff]  ;;  %v582_v1 = vld [vmem:[%s1765_s17 + $0x28] sm:$0xff]  ;;  %vm587_vm0 = vcmask 64512   ;;  %v579_v3 = vld [vmem:[%s1765_s17 + $0x10] sm:$0xff]  ;;  %v1641_v8 = vmov 0   ;;  %vm631_vm1 = vcmask 130048  }
  0x15   : > { %v586_v2 = vld [vmem:[%s1978_s2] sm:$0xff]  ;;  %606 = vmatpush.msra.mxu0 %v581_v0  ;;  %626 = vmatpush.msra.mxu1 %v582_v1  ;;  %v580_v4 = vld [vmem:[%s1765_s17 + $0x18] sm:$0xff]  ;;  %v578_v6 = vld [vmem:[%s1765_s17 + $0x8] sm:$0xff]  ;;  %vm1114_vm6 = vcmask 7168  }
  0x16   : > { %1493 = vmatmul.msk.f32.vlgmr.msra.gmra.mxu0 %vm587_vm0, %v586_v2  ;;  %1494 = vmatmul.msk.f32.vlgmr.msra.gmra.mxu1 %vm587_vm0, %v586_v2  ;;  %v577_v5 = vld [vmem:[%s1765_s17] sm:$0xff]  ;;  %v583_v26 = vld [vmem:[%s1765_s17 + $0x30] sm:$0xff]  ;;  %v584_v27 = vld [vmem:[%s1765_s17 + $0x38] sm:$0xff] }
  0x17   : > { %649 = vmatpush.msrb.mxu0 %v579_v3  ;;  %669 = vmatpush.msrb.mxu1 %v580_v4  ;;  %v675_v7 = vld [vmem:[%s1979_s3] sm:$0xff]  ;;  %v842_v31 = vld [vmem:[%s1985_s9 + $0x8] sm:$0xff]  ;;  %v843_v33 = vld [vmem:[%s1985_s9 + $0x10] sm:$0xff] }
  0x18   : > { %1578 = vset.pattern.permute.xlu0 %v1641_v8  ;;  %1579 = vset.pattern.permute.xlu1 %v1641_v8  ;;  %v585_v9 = vld [vmem:[%s1996_s1] sm:$0xff]  ;;  %v838_v32 = vld [vmem:[%s1984_s8 + $0x8] sm:$0xff]  ;;  %v839_v34 = vld [vmem:[%s1984_s8 + $0x10] sm:$0xff] }
  0x19   : > { %650 = vmatpush.msrb.mxu0 %v577_v5  ;;  %670 = vmatpush.msrb.mxu1 %v578_v6  ;;  %v823_v10 = vld [vmem:[%s1983_s7] sm:$0xff]  ;;  %v844_v35 = vld [vmem:[%s1985_s9 + $0x18] sm:$0xff]  ;;  %v1068_v48 = vld [vmem:[%s1987_s11 + $0x8] sm:$0xff] }
  0x1a   : > { %678 = vperm.xlu0 %1578, %v675_v7   ;;  %1580 = vset.pattern.permute.xlu2 %v1641_v8  ;;  %v690_v24 = vld [vmem:[%s1981_s5] sm:$0xff]  ;;  %v840_v36 = vld [vmem:[%s1984_s8 + $0x18] sm:$0xff]  ;;  %v1069_v49 = vld [vmem:[%s1987_s11 + $0x10] sm:$0xff] }
  0x1b   : > { %v841_v25 = vld [vmem:[%s1985_s9] sm:$0xff]  ;;  %1083 = vperm.xlu2 %1580, %v1069_v49   ;;  %v1070_v58 = vld [vmem:[%s1987_s11 + $0x18] sm:$0xff]  ;;  %v986_v59 = vld [vmem:[%s1986_s10 + $0x8] sm:$0xff] }
  0x1c   : > { %v689_v28 = vld [vmem:[%s1980_s4] sm:$0xff]  ;;  %v987_v60 = vld [vmem:[%s1986_s10 + $0x10] sm:$0xff]  ;;  %v988_v61 = vld [vmem:[%s1986_s10 + $0x18] sm:$0xff] }
  0x1d   : > { %v777_v29 = vld [vmem:[%s1982_s6] sm:$0xff] }
  0x1e   : > { %1495 = vmatmul.msk.f32.vlgmr.msrb.gmra.mxu0 %vm631_vm1, %v585_v9  ;;  %1496 = vmatmul.msk.f32.vlgmr.msrb.gmra.mxu1 %vm631_vm1, %v585_v9  ;;  %v837_v30 = vld [vmem:[%s1984_s8] sm:$0xff] }
  0x1f   : > { %v1067_v41 = vld [vmem:[%s1987_s11] sm:$0xff] }
  0x20   : > { %1073 = vperm.xlu1 %1579, %v1067_v41   ;;  %v985_v55 = vld [vmem:[%s1986_s10] sm:$0xff] }
  0x22   : > { %826 = vperm.xlu0 %1578, %v823_v10  }
  0x23   : > { %1088 = vperm.xlu2 %1580, %v1070_v58  }
  0x28   : > { %1078 = vperm.xlu1 %1579, %v1068_v48  }
  0x8c   : > { %v679_v17 = vpop.permute.xlu0 %678 }
  0x92   : > { %v1074_v8 = vpop.permute.xlu1 %1073 }
  0x93   : > { %v608_v11 = vpop.f32.mrf.mxu0  ;;  %v628_v12 = vpop.f32.mrf.mxu1 }
  0x94   : > { %v827_v50 = vpop.permute.xlu0 %826 }
  0x9b   : > { %v652_v13 = vpop.f32.mrf.mxu0  ;;  %v672_v14 = vpop.f32.mrf.mxu1 }
  0x9c   : > { %v653_v15 = vadd.f32 %v652_v13, %v608_v11  ;;  %v673_v16 = vadd.f32 %v672_v14, %v628_v12 }
  0x9e   : > { %v681_v18 = vadd.f32 %v679_v17, %v653_v15  ;;  %v682_v19 = vadd.f32 %v679_v17, %v673_v16  ;;  %v1642_v15 = vmov 0.0  }
  0x9f   : > { %1115 = vst.msk [vmem:[#allocation3] sm:$0xff] %vm1114_vm6, %v1642_v15 }
  0xa0   : > { %v685_v20 = vmul.f32 0.01, %v681_v18  ;;  %v686_v21 = vmul.f32 0.01, %v682_v19  ;;  %vm683_vm2 = vcmp.ge.f32.partialorder %v681_v18, 0.0  ;;  %vm684_vm3 = vcmp.ge.f32.partialorder %v682_v19, 0.0 }
  0xa1   : > { %1116 = vst.msk [vmem:[#allocation3 + $0x8] sm:$0xff] %vm1114_vm6, %v1642_v15 }
  0xa2   : > { %v687_v22 = vsel %vm683_vm2, %v681_v18, %v685_v20  ;;  %v688_v23 = vsel %vm684_vm3, %v682_v19, %v686_v21  ;;  %1117 = vst.msk [vmem:[#allocation3 + $0x10] sm:$0xff] %vm1114_vm6, %v1642_v15 }
  0xa3   : > { %709 = vmatpush.msra.mxu0 %v687_v22  ;;  %729 = vmatpush.msra.mxu1 %v688_v23  ;;  %1118 = vst.msk [vmem:[#allocation3 + $0x18] sm:$0xff] %vm1114_vm6, %v1642_v15 }
  0xa4   : > { %872 = vmatpush.msra.mxu2 %v687_v22  ;;  %901 = vmatpush.msra.mxu3 %v688_v23  ;;  %v1079_v23 = vpop.permute.xlu1 %1078 }
  0xa5   : > { %1497 = vmatmul.msk.f32.vlgmr.msra.gmra.mxu0 %vm587_vm0, %v690_v24  ;;  %1498 = vmatmul.msk.f32.vlgmr.msra.gmra.mxu1 %vm587_vm0, %v690_v24 }
  0xa6   : > { %751 = vmatpush.msrb.mxu0 %v579_v3  ;;  %771 = vmatpush.msrb.mxu1 %v580_v4 }
  0xa7   : > { %1503 = vmatmul.msk.f32.vlgmr.msra.gmra.mxu2 %vm587_vm0, %v841_v25  ;;  %1507 = vmatmul.msk.f32.vlgmr.msra.gmra.mxu3 %vm587_vm0, %v841_v25 }
  0xa8   : > { %752 = vmatpush.msrb.mxu0 %v577_v5  ;;  %772 = vmatpush.msrb.mxu1 %v578_v6  ;;  %v1120_v58 = vld [vmem:[#allocation3 + $0x8] sm:$0xff] }
  0xaa   : > { %796 = vmatpush.msra.mxu0 %v583_v26  ;;  %816 = vmatpush.msra.mxu1 %v584_v27 }
  0xad   : > { %1499 = vmatmul.msk.f32.vlgmr.msrb.gmra.mxu0 %vm631_vm1, %v689_v28  ;;  %1500 = vmatmul.msk.f32.vlgmr.msrb.gmra.mxu1 %vm631_vm1, %v689_v28 }
  0xae   : > { %941 = vmatpush.msrb.mxu0 %v579_v3  ;;  %970 = vmatpush.msrb.mxu1 %v580_v4 }
  0xaf   : > { %1504 = vmatmul.msk.f32.gmra.mxu2 %vm587_vm0, %v842_v31  ;;  %1508 = vmatmul.msk.f32.gmra.mxu3 %vm587_vm0, %v842_v31 }
  0xb0   : > { %942 = vmatpush.msrb.mxu0 %v577_v5  ;;  %971 = vmatpush.msrb.mxu1 %v578_v6 }
  0xb5   : > { %1501 = vmatmul.msk.f32.vlgmr.msra.gmra.mxu0 %vm587_vm0, %v777_v29  ;;  %1502 = vmatmul.msk.f32.vlgmr.msra.gmra.mxu1 %vm587_vm0, %v777_v29 }
  0xb7   : > { %1505 = vmatmul.msk.f32.gmra.mxu2 %vm587_vm0, %v843_v33  ;;  %1509 = vmatmul.msk.f32.gmra.mxu3 %vm587_vm0, %v843_v33 }
  0xbd   : > { %1511 = vmatmul.msk.f32.vlgmr.msrb.gmra.mxu0 %vm631_vm1, %v837_v30  ;;  %1515 = vmatmul.msk.f32.vlgmr.msrb.gmra.mxu1 %vm631_vm1, %v837_v30 }
  0xbf   : > { %1506 = vmatmul.msk.f32.gmra.mxu2 %vm587_vm0, %v844_v35  ;;  %1510 = vmatmul.msk.f32.gmra.mxu3 %vm587_vm0, %v844_v35  ;;  %v1084_v35 = vpop.permute.xlu2 %1083 }
  0xc5   : > { %1512 = vmatmul.msk.f32.gmra.mxu0 %vm631_vm1, %v838_v32  ;;  %1516 = vmatmul.msk.f32.gmra.mxu1 %vm631_vm1, %v838_v32 }
  0xcd   : > { %1513 = vmatmul.msk.f32.gmra.mxu0 %vm631_vm1, %v839_v34  ;;  %1517 = vmatmul.msk.f32.gmra.mxu1 %vm631_vm1, %v839_v34 }
  0xd5   : > { %1514 = vmatmul.msk.f32.gmra.mxu0 %vm631_vm1, %v840_v36  ;;  %1518 = vmatmul.msk.f32.gmra.mxu1 %vm631_vm1, %v840_v36 }
 0x122   : > { %v711_v37 = vpop.f32.mrf.mxu0  ;;  %v731_v38 = vpop.f32.mrf.mxu1 }
 0x12a   : > { %v754_v39 = vpop.f32.mrf.mxu0  ;;  %v774_v40 = vpop.f32.mrf.mxu1 }
 0x12b   : > { %v755_v42 = vadd.f32 %v754_v39, %v711_v37  ;;  %v775_v43 = vadd.f32 %v774_v40, %v731_v38  ;;  %v874_v62 = vpop.f32.mrf.mxu2  ;;  %v903_v63 = vpop.f32.mrf.mxu3 }
 0x132   : > { %v798_v44 = vpop.f32.mrf.mxu0  ;;  %v818_v45 = vpop.f32.mrf.mxu1 }
 0x133   : > { %v821_v46 = vadd.f32 %v798_v44, %v755_v42  ;;  %v822_v47 = vadd.f32 %v818_v45, %v775_v43  ;;  %v877_v0 = vpop.f32.mrf.mxu2  ;;  %v906_v1 = vpop.f32.mrf.mxu3 }
 0x135   : > { %v829_v51 = vadd.f32 %v827_v50, %v821_v46  ;;  %v830_v52 = vadd.f32 %v827_v50, %v822_v47 }
 0x137   : > { %vm831_vm4 = vcmp.ge.f32.partialorder %v829_v51, 0.0  ;;  %v833_v53 = vmul.f32 0.01, %v829_v51  ;;  %vm832_vm5 = vcmp.ge.f32.partialorder %v830_v52, 0.0  ;;  %v834_v54 = vmul.f32 0.01, %v830_v52 }
 0x139   : > { %v835_v56 = vsel %vm831_vm4, %v829_v51, %v833_v53  ;;  %v836_v57 = vsel %vm832_vm5, %v830_v52, %v834_v54  ;;  %v1089_v51 = vpop.permute.xlu2 %1088 }
 0x13a   : > { %1016 = vmatpush.msrb.mxu2 %v835_v56  ;;  %1045 = vmatpush.msrb.mxu3 %v836_v57  ;;  %v944_v4 = vpop.f32.mrf.mxu0  ;;  %v973_v5 = vpop.f32.mrf.mxu1 }
 0x13b   : > { %1519 = vmatmul.msk.f32.vlgmr.msrb.gmra.mxu2 %vm587_vm0, %v985_v55  ;;  %1523 = vmatmul.msk.f32.vlgmr.msrb.gmra.mxu3 %vm587_vm0, %v985_v55  ;;  %v880_v2 = vpop.f32.mrf.mxu2  ;;  %v909_v3 = vpop.f32.mrf.mxu3  ;;  %v945_v9 = vadd.f32 %v944_v4, %v874_v62  ;;  %v974_v10 = vadd.f32 %v973_v5, %v903_v63  ;;  %v1119_v55 = vld [vmem:[#allocation3] sm:$0xff] }
 0x142   : > { %v947_v11 = vpop.f32.mrf.mxu0  ;;  %v976_v12 = vpop.f32.mrf.mxu1 }
 0x143   : > { %1520 = vmatmul.msk.f32.gmra.mxu2 %vm587_vm0, %v986_v59  ;;  %1524 = vmatmul.msk.f32.gmra.mxu3 %vm587_vm0, %v986_v59  ;;  %v883_v6 = vpop.f32.mrf.mxu2  ;;  %v912_v7 = vpop.f32.mrf.mxu3  ;;  %v948_v21 = vadd.f32 %v947_v11, %v877_v0  ;;  %v977_v22 = vadd.f32 %v976_v12, %v906_v1  ;;  %v1122_v0 = vld [vmem:[#allocation3 + $0x18] sm:$0xff] }
 0x14a   : > { %v950_v28 = vpop.f32.mrf.mxu0  ;;  %v979_v29 = vpop.f32.mrf.mxu1 }
 0x14b   : > { %1521 = vmatmul.msk.f32.gmra.mxu2 %vm587_vm0, %v987_v60  ;;  %1525 = vmatmul.msk.f32.gmra.mxu3 %vm587_vm0, %v987_v60  ;;  %v951_v33 = vadd.f32 %v950_v28, %v880_v2  ;;  %v980_v34 = vadd.f32 %v979_v29, %v909_v3 }
 0x152   : > { %v953_v42 = vpop.f32.mrf.mxu0  ;;  %v982_v43 = vpop.f32.mrf.mxu1 }
 0x153   : > { %1522 = vmatmul.msk.f32.gmra.mxu2 %vm587_vm0, %v988_v61  ;;  %1526 = vmatmul.msk.f32.gmra.mxu3 %vm587_vm0, %v988_v61  ;;  %v954_v45 = vadd.f32 %v953_v42, %v883_v6  ;;  %v983_v46 = vadd.f32 %v982_v43, %v912_v7  ;;  %v1121_v61 = vld [vmem:[#allocation3 + $0x10] sm:$0xff] }
 0x1be   : > { %v1018_v13 = vpop.f32.mrf.mxu2  ;;  %v1047_v14 = vpop.f32.mrf.mxu3 }
 0x1bf   : > { %v1059_v16 = vadd.f32 %v1018_v13, %v945_v9  ;;  %v1060_v17 = vadd.f32 %v1047_v14, %v974_v10 }
 0x1c1   : > { %v1091_v18 = vadd.f32 %v1074_v8, %v1059_v16  ;;  %v1092_v19 = vadd.f32 %v1074_v8, %v1060_v17 }
 0x1c3   : > { %1102 = vst [vmem:[#allocation2 + $0x30] sm:$0xff] %v1091_v18  ;;  %v1123_v20 = vadd.f32 %v1092_v19, %v1091_v18 }
 0x1c4   : > { %1103 = vst [vmem:[#allocation2] sm:$0xff] %v1092_v19 }
 0x1c5   : > { %1124 = vadd.xlane.f32.xlu0 %v1123_v20 }
 0x1c6   : > { %v1021_v24 = vpop.f32.mrf.mxu2  ;;  %v1050_v25 = vpop.f32.mrf.mxu3 }
 0x1c7   : > { %v1061_v26 = vadd.f32 %v1021_v24, %v948_v21  ;;  %v1062_v27 = vadd.f32 %v1050_v25, %v977_v22 }
 0x1c9   : > { %v1093_v30 = vadd.f32 %v1079_v23, %v1061_v26  ;;  %v1094_v31 = vadd.f32 %v1079_v23, %v1062_v27 }
 0x1cb   : > { %1104 = vst [vmem:[#allocation2 + $0x18] sm:$0xff] %v1093_v30  ;;  %v1126_v32 = vadd.f32 %v1094_v31, %v1093_v30 }
 0x1cc   : > { %1105 = vst [vmem:[#allocation2 + $0x10] sm:$0xff] %v1094_v31 }
 0x1cd   : > { %1127 = vadd.xlane.f32.xlu1 %v1126_v32 }
 0x1ce   : > { %v1024_v36 = vpop.f32.mrf.mxu2  ;;  %v1053_v37 = vpop.f32.mrf.mxu3 }
 0x1cf   : > { %v1063_v38 = vadd.f32 %v1024_v36, %v951_v33  ;;  %v1064_v39 = vadd.f32 %v1053_v37, %v980_v34 }
 0x1d1   : > { %v1095_v40 = vadd.f32 %v1084_v35, %v1063_v38  ;;  %v1096_v41 = vadd.f32 %v1084_v35, %v1064_v39 }
 0x1d3   : > { %1106 = vst [vmem:[#allocation2 + $0x8] sm:$0xff] %v1095_v40  ;;  %v1129_v44 = vadd.f32 %v1096_v41, %v1095_v40 }
 0x1d4   : > { %1107 = vst [vmem:[#allocation2 + $0x20] sm:$0xff] %v1096_v41 }
 0x1d5   : > { %1130 = vadd.xlane.f32.xlu2 %v1129_v44 }
 0x1d6   : > { %v1027_v47 = vpop.f32.mrf.mxu2  ;;  %v1056_v48 = vpop.f32.mrf.mxu3 }
 0x1d7   : > { %v1065_v49 = vadd.f32 %v1027_v47, %v954_v45  ;;  %v1066_v50 = vadd.f32 %v1056_v48, %v983_v46 }
 0x1d9   : > { %v1097_v52 = vadd.f32 %v1089_v51, %v1065_v49  ;;  %v1098_v53 = vadd.f32 %v1089_v51, %v1066_v50 }
 0x1db   : > { %1108 = vst [vmem:[#allocation2 + $0x28] sm:$0xff] %v1097_v52  ;;  %v1132_v54 = vadd.f32 %v1098_v53, %v1097_v52 }
 0x1dc   : > { %1109 = vst [vmem:[#allocation2 + $0x38] sm:$0xff] %v1098_v53 }
 0x1dd   : > { %1133 = vadd.xlane.f32.xlu2 %v1132_v54 }
 0x238   : > { %v1125_v56 = vpop.xlane.xlu0 %1124 }
 0x239   : > { %v1135_v57 = vadd.f32 %v1125_v56, %v1119_v55 }
 0x23b   : > { %1140 = vst.msk [vmem:[#allocation3] sm:$0xff] %vm1114_vm6, %v1135_v57 }
 0x240   : > { %v1128_v59 = vpop.xlane.xlu1 %1127 }
 0x241   : > { %v1136_v60 = vadd.f32 %v1128_v59, %v1120_v58 }
 0x243   : > { %1141 = vst.msk [vmem:[#allocation3 + $0x8] sm:$0xff] %vm1114_vm6, %v1136_v60 }
 0x248   : > { %v1131_v62 = vpop.xlane.xlu2 %1130 }
 0x249   : > { %v1137_v63 = vadd.f32 %v1131_v62, %v1121_v61 }
 0x24b   : > { %1142 = vst.msk [vmem:[#allocation3 + $0x10] sm:$0xff] %vm1114_vm6, %v1137_v63 }
 0x250   : > { %v1134_v1 = vpop.xlane.xlu2 %1133 }
 0x251   : > { %v1138_v2 = vadd.f32 %v1134_v1, %v1122_v0 }
 0x253   : > { %1143 = vst.msk [vmem:[#allocation3 + $0x18] sm:$0xff] %vm1114_vm6, %v1138_v2 }
 0x254 PF: > { %p1144_p7 = scmp.eq.s32.totalorder %s1623_s21, 1 }
 0x255   : > { %v1152_v3 = vld [vmem:[#allocation3 + $0x10] sm:$0xff] (%p1144_p7)  ;;  %v1150_v4 = vld [vmem:[#allocation3] sm:$0xff] (%p1144_p7)  ;;  %v1643_v5 = vmov (%p1144_p7), 0   ;;  %v1151_v9 = vld [vmem:[#allocation3 + $0x8] sm:$0xff] (%p1144_p7)  ;;  %vm1186_vm7 = vcmask (%p1144_p7), 15360   ;;  %vm1308_vm8 = vcmask (%p1144_p7), 7168  }
 0x256   : > { %1149 = sbr.rel (!%p1144_p7) target bundleno = 913 (0x391), region = 96  ;;  %1582 = vset.pattern.permute.xlu1 (%p1144_p7), %v1643_v5  ;;  %1581 = vset.pattern.permute.xlu0 (%p1144_p7), %v1643_v5  ;;  %v1156_v6 = vmul.f32 (%p1144_p7), 0.00390625, %v1152_v3  ;;  %v1154_v7 = vmul.f32 (%p1144_p7), 0.00390625, %v1150_v4  ;;  %v1155_v11 = vmul.f32 (%p1144_p7), 0.00390625, %v1151_v9  ;;  %v1158_v14 = vld [vmem:[%s1988_s12] sm:$0xff] (%p1144_p7)  ;;  %v1160_v15 = vld [vmem:[%s1988_s12 + $0x10] sm:$0xff] (%p1144_p7) }
 0x257   : > { %v1159_v16 = vld [vmem:[%s1988_s12 + $0x8] sm:$0xff] (%p1144_p7)  ;;  %v1161_v18 = vld [vmem:[%s1988_s12 + $0x18] sm:$0xff] (%p1144_p7)  ;;  %v1200_v36 = vld [vmem:[%s1989_s13] sm:$0x1] (%p1144_p7) }
 0x258   : > { %1174 = vperm.xlu1 (%p1144_p7), %1582, %v1156_v6   ;;  %1164 = vperm.xlu0 (%p1144_p7), %1581, %v1154_v7   ;;  %v1206_v40 = vld [vmem:[%s1990_s14 + $0x18] sm:$0xff] (%p1144_p7)  ;;  %v1205_v41 = vld [vmem:[%s1990_s14 + $0x10] sm:$0xff] (%p1144_p7)  ;;  %v1203_v42 = vld [vmem:[%s1990_s14] sm:$0xff] (%p1144_p7) }
 0x259   : > { %v1204_v50 = vld [vmem:[%s1990_s14 + $0x8] sm:$0xff] (%p1144_p7)  ;;  %v1227_v53 = vld [vmem:[%s1991_s15 + $0x18] sm:$0xff] (%p1144_p7)  ;;  %v1226_v54 = vld [vmem:[%s1991_s15 + $0x10] sm:$0xff] (%p1144_p7) }
 0x25a   : > { %v1153_v8 = vld [vmem:[#allocation3 + $0x18] sm:$0xff] (%p1144_p7)  ;;  %v1224_v55 = vld [vmem:[%s1991_s15] sm:$0xff] (%p1144_p7)  ;;  %v1225_v4 = vld [vmem:[%s1991_s15 + $0x8] sm:$0xff] (%p1144_p7) }
 0x25b   : > { %v1157_v10 = vmul.f32 0.00390625, %v1153_v8 }
 0x260   : > { %1179 = vperm.xlu1 %1582, %v1157_v10   ;;  %1169 = vperm.xlu0 %1581, %v1155_v11  }
 0x2ca   : > { %v1175_v12 = vpop.permute.xlu1 %1174  ;;  %v1165_v13 = vpop.permute.xlu0 %1164 }
 0x2cb   : > { %v1182_v17 = vmul.f32 %v1165_v13, %v1158_v14  ;;  %v1184_v21 = vmul.f32 %v1175_v12, %v1160_v15 }
 0x2cd   : > { %v1187_v23 = vsel %vm1186_vm7, %v1182_v17, 0.0  ;;  %v1190_v27 = vsel %vm1186_vm7, %v1184_v21, 0.0 }
 0x2d2   : > { %v1180_v19 = vpop.permute.xlu1 %1179  ;;  %v1170_v20 = vpop.permute.xlu0 %1169 }
 0x2d3   : > { %v1183_v22 = vmul.f32 %v1170_v20, %v1159_v16  ;;  %v1185_v24 = vmul.f32 %v1180_v19, %v1161_v18 }
 0x2d5   : > { %v1188_v25 = vsel %vm1186_vm7, %v1183_v22, 0.0  ;;  %v1192_v29 = vsel %vm1186_vm7, %v1185_v24, 0.0 }
 0x2d6   : > { %v1189_v26 = vadd.f32 %v1188_v25, %v1187_v23 }
 0x2d8   : > { %v1191_v28 = vadd.f32 %v1190_v27, %v1189_v26 }
 0x2da   : > { %v1193_v30 = vadd.f32 %v1192_v29, %v1191_v28 }
 0x2dc   : > { %v1194_v31 = vrot.slane %v1193_v30, 4 }
 0x2de   : > { %v1195_v32 = vadd.f32 %v1194_v31, %v1193_v30 }
 0x2e0   : > { %v1196_v33 = vrot.slane %v1195_v32, 2 }
 0x2e2   : > { %v1197_v34 = vadd.f32 %v1196_v33, %v1195_v32 }
 0x2e4   : > { %v1198_v35 = vrot.slane %v1197_v34, 1 }
 0x2e6   : > { %v1199_v37 = vadd.f32 %v1198_v35, %v1197_v34 }
 0x2e8   : > { %v1201_v38 = vadd.f32 %v1200_v36, %v1199_v37 }
 0x2ea   : > { %v1202_v39 = vmax.f32 %v1201_v38, 0.0 }
 0x2ec   : > { %v1207_v43 = vperm.slane %v1202_v39, 0 }
 0x2ee   : > { %v1211_v44 = vmul.f32 %v1207_v43, %v1206_v40  ;;  %v1210_v45 = vmul.f32 %v1207_v43, %v1205_v41  ;;  %v1208_v46 = vmul.f32 %v1207_v43, %v1203_v42  ;;  %v1209_v51 = vmul.f32 %v1207_v43, %v1204_v50 }
 0x2f0   : > { %v1221_v47 = vsel %vm1186_vm7, %v1211_v44, 0.0  ;;  %v1218_v48 = vsel %vm1186_vm7, %v1210_v45, 0.0  ;;  %v1212_v49 = vsel %vm1186_vm7, %v1208_v46, 0.0  ;;  %v1215_v52 = vsel %vm1186_vm7, %v1209_v51, 0.0 }
 0x2f1   : > { %1222 = vadd.xlane.f32.xlu1 %v1221_v47  ;;  %1219 = vadd.xlane.f32.xlu0 %v1218_v48 }
 0x2f2   : > { %1213 = vadd.xlane.f32.xlu2 %v1212_v49 }
 0x2fa   : > { %1216 = vadd.xlane.f32.xlu2 %v1215_v52 }
 0x364   : > { %v1223_v56 = vpop.xlane.xlu1 %1222  ;;  %v1220_v57 = vpop.xlane.xlu0 %1219 }
 0x365   : > { %v1231_v58 = vadd.f32 %v1227_v53, %v1223_v56  ;;  %v1230_v59 = vadd.f32 %v1226_v54, %v1220_v57  ;;  %v1214_v60 = vpop.xlane.xlu2 %1213 }
 0x366   : > { %v1228_v61 = vadd.f32 %v1224_v55, %v1214_v60 }
 0x367   : > { %v1235_v62 = vsub.f32 0.0, %v1231_v58  ;;  %v1234_v63 = vsub.f32 0.0, %v1230_v59 }
 0x368   : > { %v1232_v0 = vsub.f32 0.0, %v1228_v61 }
 0x369   : > { %v1242_v1 = vmul.f32 1.442695, %v1235_v62  ;;  %v1240_v2 = vmul.f32 1.442695, %v1234_v63 }
 0x36a   : > { %v1236_v3 = vmul.f32 1.442695, %v1232_v0 }
 0x36b   : > { %1583 = vpow2.f32 %v1242_v1 }
 0x36c   : > { %1585 = vpow2.f32 %v1240_v2 }
 0x36d   : > { %1587 = vpow2.f32 %v1236_v3  ;;  %v1217_v5 = vpop.xlane.xlu2 %1216 }
 0x36e   : > { %v1229_v6 = vadd.f32 %v1225_v4, %v1217_v5 }
 0x370   : > { %v1233_v7 = vsub.f32 0.0, %v1229_v6 }
 0x371   : > { %v1584_v8 = vpop.eup %1583 }
 0x372   : > { %v1586_v9 = vpop.eup %1585  ;;  %v1247_v10 = vadd.f32 1.0, %v1584_v8  ;;  %v1238_v11 = vmul.f32 1.442695, %v1233_v7 }
 0x373   : > { %v1588_v12 = vpop.eup %1587  ;;  %v1246_v13 = vadd.f32 1.0, %v1586_v9 }
 0x374   : > { %1589 = vrcp.f32 %v1247_v10  ;;  %v1244_v14 = vadd.f32 1.0, %v1588_v12  ;;  %v1302_v21 = vand.u32 2147483647, %v1247_v10  ;;  %v1304_v24 = vand.u32 2147483648, %v1247_v10 }
 0x375   : > { %1591 = vrcp.f32 %v1246_v13  ;;  %v1289_v26 = vand.u32 2147483648, %v1246_v13  ;;  %vm1298_vm10 = vweird.f32 %v1247_v10  ;;  %v1287_v30 = vand.u32 2147483647, %v1246_v13 }
 0x376   : > { %1593 = vpow2.f32 %v1238_v11  ;;  %vm1303_vm12 = vcmp.eq.f32.partialorder %v1302_v21, 8.507059e+37  ;;  %vm1283_vm13 = vweird.f32 %v1246_v13  ;;  %v1305_v33 = vor.u32 1.1754944e-38, %v1304_v24 }
 0x377   : > { %1595 = vrcp.f32 %v1244_v14  ;;  %v1290_v35 = vor.u32 1.1754944e-38, %v1289_v26  ;;  %v1259_v36 = vand.u32 2147483648, %v1244_v14  ;;  %v1257_v39 = vand.u32 2147483647, %v1244_v14 }
 0x378   : > { %vm1288_vm1 = vcmp.eq.f32.partialorder %v1287_v30, 8.507059e+37  ;;  %vm1253_vm2 = vweird.f32 %v1244_v14 }
 0x379   : > { %v1260_v45 = vor.u32 1.1754944e-38, %v1259_v36  ;;  %vm1258_vm4 = vcmp.eq.f32.partialorder %v1257_v39, 8.507059e+37 }
 0x37a   : > { %v1590_v15 = vpop.eup %1589 }
 0x37b   : > { %v1592_v16 = vpop.eup %1591  ;;  %v1294_v17 = vmul.f32 %v1590_v15, %v1247_v10  ;;  %vm1299_vm9 = vweird.f32 %v1590_v15 }
 0x37c   : > { %v1594_v18 = vpop.eup %1593  ;;  %v1279_v19 = vmul.f32 %v1592_v16, %v1246_v13  ;;  %vm1284_vm11 = vweird.f32 %v1592_v16  ;;  %vm1300_vm14 = vmor %vm1298_vm10, %vm1299_vm9 }
 0x37d   : > { %v1295_v20 = vsub.f32 1.0, %v1294_v17  ;;  %v1245_v22 = vadd.f32 1.0, %v1594_v18  ;;  %v1596_v23 = vpop.eup %1595  ;;  %vm1285_vm15 = vmor %vm1283_vm13, %vm1284_vm11 }
 0x37e   : > { %v1280_v25 = vsub.f32 1.0, %v1279_v19  ;;  %v1249_v28 = vmul.f32 %v1596_v23, %v1244_v14  ;;  %vm1254_vm0 = vweird.f32 %v1596_v23 }
 0x37f   : > { %v1296_v27 = vmul.f32 %v1590_v15, %v1295_v20  ;;  %1597 = vrcp.f32 %v1245_v22  ;;  %vm1255_vm3 = vmor %vm1253_vm2, %vm1254_vm0  ;;  %v1274_v50 = vand.u32 2147483648, %v1245_v22  ;;  %v1272_v52 = vand.u32 2147483647, %v1245_v22 }
 0x380   : > { %v1281_v29 = vmul.f32 %v1592_v16, %v1280_v25  ;;  %v1250_v32 = vsub.f32 1.0, %v1249_v28  ;;  %vm1268_vm6 = vweird.f32 %v1245_v22 }
 0x381   : > { %v1297_v31 = vadd.f32 %v1590_v15, %v1296_v27  ;;  %v1275_v54 = vor.u32 1.1754944e-38, %v1274_v50  ;;  %vm1273_vm9 = vcmp.eq.f32.partialorder %v1272_v52, 8.507059e+37 }
 0x382   : > { %v1282_v34 = vadd.f32 %v1592_v16, %v1281_v29  ;;  %v1251_v38 = vmul.f32 %v1596_v23, %v1250_v32 }
 0x383   : > { %v1301_v37 = vsel %vm1300_vm14, %v1590_v15, %v1297_v31 }
 0x384   : > { %v1306_v40 = vsel %vm1303_vm12, %v1305_v33, %v1301_v37  ;;  %v1286_v41 = vsel %vm1285_vm15, %v1592_v16, %v1282_v34  ;;  %v1252_v44 = vadd.f32 %v1596_v23, %v1251_v38 }
 0x385   : > { %v1598_v42 = vpop.eup %1597  ;;  %1312 = vst.msk [vmem:[#allocation4 + $0x18] sm:$0xff] %vm1308_vm8, %v1306_v40  ;;  %v1291_v43 = vsel %vm1288_vm1, %v1290_v35, %v1286_v41 }
 0x386   : > { %1311 = vst.msk [vmem:[#allocation4 + $0x10] sm:$0xff] %vm1308_vm8, %v1291_v43  ;;  %v1264_v46 = vmul.f32 %v1598_v42, %v1245_v22  ;;  %v1256_v47 = vsel %vm1255_vm3, %v1596_v23, %v1252_v44  ;;  %vm1269_vm5 = vweird.f32 %v1598_v42 }
 0x387   : > { %v1261_v48 = vsel %vm1258_vm4, %v1260_v45, %v1256_v47  ;;  %vm1270_vm7 = vmor %vm1268_vm6, %vm1269_vm5 }
 0x388   : > { %v1265_v49 = vsub.f32 1.0, %v1264_v46  ;;  %1309 = vst.msk [vmem:[#allocation4] sm:$0xff] %vm1308_vm8, %v1261_v48 }
 0x38a   : > { %v1266_v51 = vmul.f32 %v1598_v42, %v1265_v49 }
 0x38c   : > { %v1267_v53 = vadd.f32 %v1598_v42, %v1266_v51 }
 0x38e   : > { %v1271_v55 = vsel %vm1270_vm7, %v1598_v42, %v1267_v53 }
 0x38f   : > { %v1276_v56 = vsel %vm1273_vm9, %v1275_v54, %v1271_v55 }
 0x390   : > { %1310 = vst.msk [vmem:[#allocation4 + $0x8] sm:$0xff] %vm1308_vm8, %v1276_v56 }
 0x391 PF: > { %p1528_p8 = scmp.ne.s32.totalorder %s1623_s21, 1 }
 0x393   : > { %1315 = sbr.rel (%p1528_p8) target bundleno = 1053 (0x41d), region = 100 }
 0x398   : > { %v1337_v57 = vld [vmem:[#allocation4 + $0x10] sm:$0xff]  ;;  %v1335_v58 = vld [vmem:[#allocation4] sm:$0xff]  ;;  %v1644_v59 = vmov 0   ;;  %v1338_v60 = vld [vmem:[#allocation4 + $0x18] sm:$0xff] }
 0x399   : > { %1600 = vset.pattern.permute.xlu1 %v1644_v59  ;;  %1599 = vset.pattern.permute.xlu0 %v1644_v59  ;;  %v1336_v61 = vld [vmem:[#allocation4 + $0x8] sm:$0xff]  ;;  %v1332_v63 = vld [vmem:[#allocation2 + $0x20] sm:$0xff]  ;;  %v1327_v0 = vld [vmem:[#allocation2 + $0x30] sm:$0xff] }
 0x39a   : > { %1351 = vperm.xlu1 %1600, %v1337_v57   ;;  %1341 = vperm.xlu0 %1599, %v1335_v58   ;;  %v1331_v62 = vld [vmem:[#allocation2 + $0x8] sm:$0xff]  ;;  %v1328_v1 = vld [vmem:[#allocation2] sm:$0xff]  ;;  %v1334_v17 = vld [vmem:[#allocation2 + $0x38] sm:$0xff] }
 0x39b   : > { %v1320_v3 = vld [vmem:[%s1765_s17 + $0x20] sm:$0xff]  ;;  %v1321_v4 = vld [vmem:[%s1765_s17 + $0x28] sm:$0xff]  ;;  %v1329_v18 = vld [vmem:[#allocation2 + $0x18] sm:$0xff] }
 0x39c   : > { %v1316_v6 = vld [vmem:[%s1765_s17] sm:$0xff]  ;;  %v1317_v9 = vld [vmem:[%s1765_s17 + $0x8] sm:$0xff]  ;;  %v1330_v19 = vld [vmem:[#allocation2 + $0x10] sm:$0xff] }
 0x39d   : > { %v1333_v16 = vld [vmem:[#allocation2 + $0x28] sm:$0xff]  ;;  %v1322_v21 = vld [vmem:[%s1765_s17 + $0x30] sm:$0xff]  ;;  %v1323_v22 = vld [vmem:[%s1765_s17 + $0x38] sm:$0xff] }
 0x39e   : > { %v1318_v24 = vld [vmem:[%s1765_s17 + $0x10] sm:$0xff]  ;;  %v1319_v27 = vld [vmem:[%s1765_s17 + $0x18] sm:$0xff] }
 0x3a2   : > { %1356 = vperm.xlu1 %1600, %v1338_v60   ;;  %1346 = vperm.xlu0 %1599, %v1336_v61  }
 0x40c   : > { %v1352_v2 = vpop.permute.xlu1 %1351  ;;  %v1342_v5 = vpop.permute.xlu0 %1341 }
 0x40d   : > { %v1363_v7 = vmul.f32 %v1352_v2, %v1331_v62  ;;  %v1364_v8 = vmul.f32 %v1352_v2, %v1332_v63  ;;  %v1359_v10 = vmul.f32 %v1342_v5, %v1327_v0  ;;  %v1360_v11 = vmul.f32 %v1342_v5, %v1328_v1 }
 0x40f   : > { %v1371_v12 = vadd.f32 %v1363_v7, %v1320_v3  ;;  %v1372_v13 = vadd.f32 %v1364_v8, %v1321_v4  ;;  %v1367_v14 = vadd.f32 %v1359_v10, %v1316_v6  ;;  %v1368_v15 = vadd.f32 %v1360_v11, %v1317_v9 }
 0x411   : > { %1379 = vst [vmem:[%s1770_s20 + $0x20] sm:$0xff] %v1371_v12 }
 0x412   : > { %1380 = vst [vmem:[%s1770_s20 + $0x28] sm:$0xff] %v1372_v13 }
 0x413   : > { %1375 = vst [vmem:[%s1770_s20] sm:$0xff] %v1367_v14 }
 0x414   : > { %1376 = vst [vmem:[%s1770_s20 + $0x8] sm:$0xff] %v1368_v15  ;;  %v1357_v20 = vpop.permute.xlu1 %1356  ;;  %v1347_v23 = vpop.permute.xlu0 %1346 }
 0x415   : > { %v1365_v25 = vmul.f32 %v1357_v20, %v1333_v16  ;;  %v1366_v26 = vmul.f32 %v1357_v20, %v1334_v17  ;;  %v1361_v28 = vmul.f32 %v1347_v23, %v1329_v18  ;;  %v1362_v29 = vmul.f32 %v1347_v23, %v1330_v19 }
 0x417   : > { %v1373_v30 = vadd.f32 %v1365_v25, %v1322_v21  ;;  %v1374_v31 = vadd.f32 %v1366_v26, %v1323_v22  ;;  %v1369_v32 = vadd.f32 %v1361_v28, %v1318_v24  ;;  %v1370_v33 = vadd.f32 %v1362_v29, %v1319_v27 }
 0x419   : > { %1381 = vst [vmem:[%s1770_s20 + $0x30] sm:$0xff] %v1373_v30 }
 0x41a   : > { %1382 = vst [vmem:[%s1770_s20 + $0x38] sm:$0xff] %v1374_v31 }
 0x41b   : > { %1377 = vst [vmem:[%s1770_s20 + $0x10] sm:$0xff] %v1369_v32 }
 0x41c   : > { %1378 = vst [vmem:[%s1770_s20 + $0x18] sm:$0xff] %v1370_v33 }
 0x41d PF: > { %s26_s25 = sadd.s32 1, %s1639_s25   ;;  %s1997_s21 = smov %s1631_s23 }
 0x41e   : > { %p23_p9 = scmp.ge.s32.totalorder %s26_s25, 6   ;;  %s1998_s22 = smov %s1635_s24 }
 0x41f   : > { %s1999_s23 = smov %s2002_s26  ;;  %s2000_s24 = smov %s2006_s27 }
 0x420   :  { %25 = sbr.rel (!%p23_p9) target bundleno = 4 (0x4), region = 132 }

</bundles_post_ra>
